<compile_context>
chip_gen: v7x
topology: tpu7x:2x2x1
jax: 0.10.0
libtpu: 0.0.40
codegen_flags: <defaults>
</compile_context>

<pallas_src>
import functools

import jax
import jax.numpy as jnp
from jax import lax
from jax.experimental import pallas as pl
from jax.experimental.pallas import tpu as pltpu


# ---------------------------------------------------------------------------
# Hardware budgets & small helpers
# ---------------------------------------------------------------------------
@functools.lru_cache(maxsize=None)
def _hw_budget():
    """(vmem_limit_bytes, tm_target, tq_target) sized from physical VMEM.

    v5e / v6e (128 MiB VMEM) -> 64 MB scoped limit, larger streamed tiles.
    v7x (64 MiB VMEM) or unknown -> conservative 32 MB limit, TQ capped at 512.
    """
    try:
        cap = int(pltpu.get_tpu_info().vmem_capacity_bytes)
    except Exception:
        cap = 0  # unknown -> conservative (v7x-safe) budget
    if cap >= 128 * 1024 * 1024:
        return 64 * 1024 * 1024, 512, 1024
    return 32 * 1024 * 1024, 256, 512


def _round_up(x, m):
    return ((x + m - 1) // m) * m


def _pick_row_tile(m, target):
    """Row tile for the streamed (parallel) grid axis.

    Large M: stream `target`-row tiles.  Small M: still split into >= 2 tiles
    (multiples of 8 sublanes) when possible so a 2-TensorCore chip (v7x) can
    shard the "parallel" axis; degenerate M <= 8 uses the full dimension.
    """
    if m > target:
        return target
    if m <= 8:
        return m
    return _round_up(pl.cdiv(m, 2), 8)


def _probe_copy_kernel(x_ref, o_ref):
    o_ref[...] = x_ref[...]


@functools.lru_cache(maxsize=None)
def _buffered_supported():
    """Probe whether pipeline_mode=pl.Buffered(1) is supported end-to-end."""
    if not hasattr(pl, "Buffered"):
        return False
    try:
        fn = pl.pallas_call(
            _probe_copy_kernel,
            out_shape=jax.ShapeDtypeStruct((8, 128), jnp.float32),
            grid=(1,),
            in_specs=[pl.BlockSpec((8, 128), lambda i: (0, 0),
                                   pipeline_mode=pl.Buffered(1))],
            out_specs=pl.BlockSpec((8, 128), lambda i: (0, 0)),
        )
        jax.block_until_ready(fn(jnp.zeros((8, 128), jnp.float32)))
        return True
    except Exception:
        return False


def _resident_spec(block_shape, index_map):
    """Constant-index block: fetched once; single-buffered to halve its VMEM."""
    if _buffered_supported():
        return pl.BlockSpec(block_shape, index_map, pipeline_mode=pl.Buffered(1))
    return pl.BlockSpec(block_shape, index_map)


# ---------------------------------------------------------------------------
# Kernel 1: row-tiled matmul + bias   (q / kv / fused qkv projections)
# ---------------------------------------------------------------------------
def _linear_kernel(x_ref, w_ref, b_ref, o_ref):
    acc = jnp.dot(x_ref[...], w_ref[...], preferred_element_type=jnp.float32)
    o_ref[...] = (acc + b_ref[...].astype(jnp.float32)).astype(o_ref.dtype)


def linear(x, w, b):
    # x: (M, K), w: (K, N), b: (N,)
    M, K = x.shape
    N = w.shape[1]
    vmem_limit, tm_target, _ = _hw_budget()
    TM = _pick_row_tile(M, tm_target)
    cost = pl.CostEstimate(
        flops=2 * M * K * N,
        transcendentals=0,
        bytes_accessed=(M * K + K * N + M * N) * x.dtype.itemsize,
    )
    return pl.pallas_call(
        _linear_kernel,
        out_shape=jax.ShapeDtypeStruct((M, N), x.dtype),
        grid=(pl.cdiv(M, TM),),
        in_specs=[
            pl.BlockSpec((TM, K), lambda i: (i, 0)),          # streamed rows
            _resident_spec((K, N), lambda i: (0, 0)),         # resident weight
            _resident_spec((1, N), lambda i: (0, 0)),         # resident bias
        ],
        out_specs=pl.BlockSpec((TM, N), lambda i: (i, 0)),
        compiler_params=pltpu.CompilerParams(
            dimension_semantics=("parallel",),
            vmem_limit_bytes=vmem_limit,
        ),
        cost_estimate=cost,
    )(x, w, b.reshape(1, N))


# ---------------------------------------------------------------------------
# Kernel 2: row-tiled matmul + bias + LayerNorm epilogue
#           (spatial-reduction conv-as-matmul fused with self.norm)
# ---------------------------------------------------------------------------
def _linear_ln_kernel(x_ref, w_ref, b_ref, g_ref, bb_ref, o_ref, *, eps):
    acc = jnp.dot(x_ref[...], w_ref[...], preferred_element_type=jnp.float32)
    y = acc + b_ref[...].astype(jnp.float32)                  # (TM, N) f32
    mean = jnp.mean(y, axis=-1, keepdims=True)
    var = jnp.mean((y - mean) ** 2, axis=-1, keepdims=True)   # biased, like torch
    y = (y - mean) * lax.rsqrt(var + eps)
    o_ref[...] = (y * g_ref[...].astype(jnp.float32)
                  + bb_ref[...].astype(jnp.float32)).astype(o_ref.dtype)


def linear_layernorm(x, w, b, gamma, beta, *, eps=1e-5):
    M, K = x.shape
    N = w.shape[1]
    vmem_limit, tm_target, _ = _hw_budget()
    TM = _pick_row_tile(M, tm_target)
    return pl.pallas_call(
        functools.partial(_linear_ln_kernel, eps=eps),
        out_shape=jax.ShapeDtypeStruct((M, N), x.dtype),
        grid=(pl.cdiv(M, TM),),
        in_specs=[
            pl.BlockSpec((TM, K), lambda i: (i, 0)),
            _resident_spec((K, N), lambda i: (0, 0)),
            _resident_spec((1, N), lambda i: (0, 0)),
            _resident_spec((1, N), lambda i: (0, 0)),
            _resident_spec((1, N), lambda i: (0, 0)),
        ],
        out_specs=pl.BlockSpec((TM, N), lambda i: (i, 0)),
        compiler_params=pltpu.CompilerParams(
            dimension_semantics=("parallel",),
            vmem_limit_bytes=vmem_limit,
        ),
    )(x, w, b.reshape(1, N), gamma.reshape(1, N), beta.reshape(1, N))


# ---------------------------------------------------------------------------
# Kernel 3: fused multi-head SDPA + output projection.
#   One (batch, query-tile) per grid step; heads statically unrolled; per-head
#   q/k/v sliced straight off the refs in their native dtype (bf16 MXU path);
#   f32 VMEM scratch accumulates the lane-dense (TQ, C) attention output which
#   then feeds the fused self.proj GEMM.
# ---------------------------------------------------------------------------
def _attn_proj_kernel(q_ref, kv_ref, pw_ref, pb_ref, o_ref, acc_ref, *,
                      num_heads, head_dim):
    C = num_heads * head_dim
    for h in range(num_heads):                                # static unroll
        lo = h * head_dim
        # Native dtype, no upcast: MXU accumulates in f32 via preferred type.
        q = q_ref[0, :, lo:lo + head_dim]                     # (TQ, hd)
        k = kv_ref[0, :, lo:lo + head_dim]                    # (Nk, hd)
        v = kv_ref[0, :, C + lo:C + lo + head_dim]            # (Nk, hd)

        # q @ k^T without materializing a transpose of k (scale pre-folded
        # into the q projection weights).
        s = lax.dot_general(q, k, (((1,), (1,)), ((), ())),
                            preferred_element_type=jnp.float32)   # (TQ, Nk) f32
        m = jnp.max(s, axis=-1, keepdims=True)
        p = jnp.exp(s - m)                                    # f32 softmax stats
        l = jnp.sum(p, axis=-1, keepdims=True)
        o = jnp.dot(p.astype(v.dtype), v,
                    preferred_element_type=jnp.float32)       # (TQ, hd) f32
        # Normalize after the PV matmul (EUP approx reciprocal ~ free) and
        # store into the f32 scratch: bounds live ranges, no concat shuffles.
        acc_ref[:, lo:lo + head_dim] = o * pl.reciprocal(l, approx=True)

    # Fused output projection (self.proj) epilogue; lane-dense (TQ, C) output.
    out = jnp.dot(acc_ref[...].astype(pw_ref.dtype), pw_ref[...],
                  preferred_element_type=jnp.float32)
    o_ref[0] = (out + pb_ref[...].astype(jnp.float32)).astype(o_ref.dtype)


def sdpa_proj(q_arr, kv_arr, proj_w, proj_b, *, num_heads, n_q, n_kv, dim,
              q_ch_block):
    """q_arr holds q in C channels starting at block index `q_ch_block` along
    its last axis (0 for a plain (B, N, C) array, 2 for the packed [kv | q]
    (B, N, 3C) array); kv_arr holds kv in its first 2C channels."""
    B = q_arr.shape[0]
    C = dim
    hd = C // num_heads
    vmem_limit, _, tq_target = _hw_budget()
    TQ = _pick_row_tile(n_q, tq_target)
    cost = pl.CostEstimate(
        flops=4 * B * num_heads * n_q * n_kv * hd + 2 * B * n_q * C * C,
        transcendentals=B * num_heads * n_q * n_kv,
        bytes_accessed=(B * n_q * C + B * n_kv * 2 * C + C * C + B * n_q * C)
        * q_arr.dtype.itemsize,
    )
    return pl.pallas_call(
        functools.partial(_attn_proj_kernel, num_heads=num_heads, head_dim=hd),
        out_shape=jax.ShapeDtypeStruct((B, n_q, C), q_arr.dtype),
        grid=(B, pl.cdiv(n_q, TQ)),
        in_specs=[
            pl.BlockSpec((1, TQ, C), lambda b, i: (b, i, q_ch_block)),
            pl.BlockSpec((1, n_kv, 2 * C), lambda b, i: (b, 0, 0)),
            _resident_spec((C, C), lambda b, i: (0, 0)),
            _resident_spec((1, C), lambda b, i: (0, 0)),
        ],
        out_specs=pl.BlockSpec((1, TQ, C), lambda b, i: (b, i, 0)),
        scratch_shapes=[pltpu.VMEM((TQ, C), jnp.float32)],
        compiler_params=pltpu.CompilerParams(
            dimension_semantics=("parallel", "parallel"),
            vmem_limit_bytes=vmem_limit,
        ),
        cost_estimate=cost,
    )(q_arr, kv_arr, proj_w, proj_b.reshape(1, C))


# ---------------------------------------------------------------------------
# Full forward pass (mirrors Attention.forward; dropout is identity in eval)
# ---------------------------------------------------------------------------
def attention_forward(x, H, W, params, *, num_heads, sr_ratio):
    B, N, C = x.shape
    hd = C // num_heads
    scale = hd ** -0.5

    # Fold the softmax scale into the q projection (accumulate in f32, then
    # cast back to the weight dtype): removes in-kernel q*scale and keeps q in
    # its native dtype on the MXU.  In production this fold (and the qkv
    # concat below) is done once at weight-load time.
    q_w = (params["q_w"].astype(jnp.float32) * scale).astype(params["q_w"].dtype)
    q_b = (params["q_b"].astype(jnp.float32) * scale).astype(params["q_b"].dtype)

    if sr_ratio > 1:
        sr = sr_ratio
        Hs, Ws = H // sr, W // sr
        Nk = Hs * Ws
        q_arr = linear(x.reshape(B * N, C), q_w, q_b).reshape(B, N, C)
        # TODO(synk): fuse this patch relayout into linear_layernorm with a
        # strided-DMA / scalar-prefetch gather straight from (B, H, W, C); it
        # is currently one plain-JAX pass over x (patches flattened (kh,kw,c)
        # so only a single axis pair is permuted).
        xs = x.reshape(B, Hs, sr, Ws, sr, C)
        xs = xs.transpose(0, 1, 3, 2, 4, 5).reshape(B * Nk, sr * sr * C)
        # self.sr (conv-as-matmul) fused with self.norm (LayerNorm).
        x_ = linear_layernorm(xs, params["sr_w"], params["sr_b"],
                              params["ln_g"], params["ln_b"])
        kv_arr = linear(x_, params["kv_w"], params["kv_b"]).reshape(B, Nk, 2 * C)
        q_ch_block = 0
    else:
        Nk = N
        if C % 128 == 0:
            # Fused q+kv projection: one HBM pass over x and a wider GEMM.
            # Columns ordered [kv | q] so the attention BlockSpecs slice both
            # straight out of the packed result with integral block indices.
            qkv_w = jnp.concatenate([params["kv_w"], q_w], axis=1)
            qkv_b = jnp.concatenate([params["kv_b"], q_b], axis=0)
            qkv = linear(x.reshape(B * N, C), qkv_w, qkv_b).reshape(B, N, 3 * C)
            q_arr = kv_arr = qkv
            q_ch_block = 2
        else:
            x2d = x.reshape(B * N, C)
            q_arr = linear(x2d, q_w, q_b).reshape(B, N, C)
            kv_arr = linear(x2d, params["kv_w"],
                            params["kv_b"]).reshape(B, N, 2 * C)
            q_ch_block = 0

    # scaled_dot_product_attention + self.proj fused (attn_drop / proj_drop
    # are identity at inference).
    return sdpa_proj(q_arr, kv_arr, params["proj_w"], params["proj_b"],
                     num_heads=num_heads, n_q=N, n_kv=Nk, dim=C,
                     q_ch_block=q_ch_block)


# ---------------------------------------------------------------------------
# Pure-JAX reference (for sanity check only)
# ---------------------------------------------------------------------------
def attention_forward_ref(x, H, W, params, *, num_heads, sr_ratio):
    B, N, C = x.shape
    hd = C // num_heads
    scale = hd ** -0.5
    q = x.reshape(B * N, C) @ params["q_w"] + params["q_b"]
    q = q.reshape(B, N, num_heads, hd).transpose(0, 2, 1, 3)
    if sr_ratio > 1:
        sr = sr_ratio
        Hs, Ws = H // sr, W // sr
        xs = x.reshape(B, Hs, sr, Ws, sr, C)
        xs = xs.transpose(0, 1, 3, 2, 4, 5).reshape(B * Hs * Ws, sr * sr * C)
        x_ = xs @ params["sr_w"] + params["sr_b"]
        mu = x_.mean(-1, keepdims=True)
        var = ((x_ - mu) ** 2).mean(-1, keepdims=True)
        x_ = (x_ - mu) / jnp.sqrt(var + 1e-5) * params["ln_g"] + params["ln_b"]
        Nk = Hs * Ws
    else:
        x_ = x.reshape(B * N, C)
        Nk = N
    kv = x_ @ params["kv_w"] + params["kv_b"]
    kv = kv.reshape(B, Nk, 2, num_heads, hd).transpose(2, 0, 3, 1, 4)
    k, v = kv[0], kv[1]
    s = jnp.einsum("bhnd,bhkd->bhnk", q, k) * scale
    p = jax.nn.softmax(s, axis=-1)
    o = jnp.einsum("bhnk,bhkd->bhnd", p, v)
    o = o.transpose(0, 2, 1, 3).reshape(B * N, C)
    out = o @ params["proj_w"] + params["proj_b"]
    return out.reshape(B, N, C)


if __name__ == "__main__":
    B, C, H, W = 2, 128, 8, 8
    num_heads = 2          # head_dim = 64, as in SegFormer stage 2
    sr_ratio = 2
    N = H * W

    key = jax.random.PRNGKey(0)
    keys = jax.random.split(key, 8)

    def init(k, shape, s=0.02):
        return (s * jax.random.normal(k, shape)).astype(jnp.float32)

    params = {
        # nn.Linear(dim, dim, bias=False): stored (in, out); zero bias == no bias
        "q_w": init(keys[0], (C, C)),
        "q_b": jnp.zeros((C,), jnp.float32),
        "kv_w": init(keys[1], (C, 2 * C)),
        "kv_b": jnp.zeros((2 * C,), jnp.float32),
        # nn.Linear(dim, dim) with bias
        "proj_w": init(keys[2], (C, C)),
        "proj_b": init(keys[3], (C,)),
        # nn.Conv2d(C, C, k=sr, stride=sr) weight, pre-flattened (kh, kw, c_in)
        # major->minor, i.e. torch weight (C,C,sr,sr).permute(2,3,1,0).reshape(-1, C)
        "sr_w": init(keys[4], (sr_ratio * sr_ratio * C, C)),
        "sr_b": init(keys[5], (C,)),
        # nn.LayerNorm(dim)
        "ln_g": 1.0 + init(keys[6], (C,)),
        "ln_b": init(keys[7], (C,)),
    }

    x = jax.random.normal(jax.random.PRNGKey(1), (B, N, C), dtype=jnp.float32)

    # sr_ratio > 1 path (conv + LayerNorm fused, then attention + proj fused)
    out = attention_forward(x, H, W, params, num_heads=num_heads,
                            sr_ratio=sr_ratio)
    jax.block_until_ready(out)
    assert out.shape == (B, N, C)
    ref = attention_forward_ref(x, H, W, params, num_heads=num_heads,
                                sr_ratio=sr_ratio)
    assert jnp.allclose(out, ref, atol=1e-2, rtol=1e-2), \
        float(jnp.abs(out - ref).max())

    # sr_ratio == 1 path (fused q+kv projection, attention + proj fused)
    out1 = attention_forward(x, H, W, params, num_heads=num_heads, sr_ratio=1)
    jax.block_until_ready(out1)
    ref1 = attention_forward_ref(x, H, W, params, num_heads=num_heads,
                                 sr_ratio=1)
    assert jnp.allclose(out1, ref1, atol=1e-2, rtol=1e-2), \
        float(jnp.abs(out1 - ref1).max())

    print("KERNEL_OK")
</pallas_src>

<mosaic_0001>
module attributes {stable_mosaic.version = 11 : i64} {
  func.func @_probe_copy_kernel(%arg0: i32, %arg1: memref<8x128xf32, #tpu.memory_space<vmem>>, %arg2: memref<8x128xf32, #tpu.memory_space<vmem>>) attributes {dimension_semantics = [#tpu.dimension_semantics<arbitrary>], iteration_bounds = array<i64: 1>, scalar_prefetch = 0 : i64, scratch_operands = 0 : i64, tpu.core_type = #tpu.core_type<tc>, window_params = [{pipeline_mode = #tpu.pipeline_mode<synchronous>, transform_indices = @transform_0, window_bounds = array<i64: 8, 128>}, {pipeline_mode = #tpu.pipeline_mode<synchronous>, transform_indices = @transform_1, window_bounds = array<i64: 8, 128>}]} {
    %c0 = arith.constant 0 : index
    %c0_0 = arith.constant 0 : index
    %0 = vector.load %arg1[%c0, %c0_0] : memref<8x128xf32, #tpu.memory_space<vmem>>, vector<8x128xf32>
    %c0_1 = arith.constant 0 : index
    %c0_2 = arith.constant 0 : index
    %1 = vector.load %arg2[%c0_1, %c0_2] : memref<8x128xf32, #tpu.memory_space<vmem>>, vector<8x128xf32>
    tpu.vector_store %arg2[%c0_1, %c0_2], %0 {strides = array<i32>} : memref<8x128xf32, #tpu.memory_space<vmem>>, vector<8x128xf32>,
    return
  }
  func.func @transform_0(%arg0: i32) -> (i32, i32) {
    %c0_i32 = arith.constant 0 : i32
    %c0_i32_0 = arith.constant 0 : i32
    %c0_i32_1 = arith.constant 0 : i32
    return %c0_i32, %c0_i32_0 : i32, i32
  }
  func.func @transform_1(%arg0: i32) -> (i32, i32) {
    %c0_i32 = arith.constant 0 : i32
    %c0_i32_0 = arith.constant 0 : i32
    %c0_i32_1 = arith.constant 0 : i32
    return %c0_i32, %c0_i32_0 : i32, i32
  }
}

module attributes {stable_mosaic.version = 11 : i64} {
  func.func @_linear_kernel(%arg0: i32, %arg1: memref<64x128xf32, #tpu.memory_space<vmem>>, %arg2: memref<128x128xf32, #tpu.memory_space<vmem>>, %arg3: memref<1x128xf32, #tpu.memory_space<vmem>>, %arg4: memref<64x128xf32, #tpu.memory_space<vmem>>) attributes {dimension_semantics = [#tpu.dimension_semantics<parallel>], iteration_bounds = array<i64: 2>, scalar_prefetch = 0 : i64, scratch_operands = 0 : i64, tpu.core_type = #tpu.core_type<tc>, window_params = [{transform_indices = @transform_0, window_bounds = array<i64: 64, 128>}, {pipeline_mode = #tpu.pipeline_mode<synchronous>, transform_indices = @transform_1, window_bounds = array<i64: 128, 128>}, {pipeline_mode = #tpu.pipeline_mode<synchronous>, transform_indices = @transform_2, window_bounds = array<i64: 1, 128>}, {transform_indices = @transform_3, window_bounds = array<i64: 64, 128>}]} {
    %c0 = arith.constant 0 : index
    %c0_0 = arith.constant 0 : index
    %0 = vector.load %arg1[%c0, %c0_0] : memref<64x128xf32, #tpu.memory_space<vmem>>, vector<64x128xf32>
    %c0_1 = arith.constant 0 : index
    %c0_2 = arith.constant 0 : index
    %1 = vector.load %arg2[%c0_1, %c0_2] : memref<128x128xf32, #tpu.memory_space<vmem>>, vector<128x128xf32>
    %cst = arith.constant dense<0.000000e+00> : vector<64x128xf32>
    %2 = tpu.matmul %0, %1, %cst {dimension_numbers = #tpu.dot_dimension_numbers<[1], [0], [0], [1], [0, 0, 1, 1], [], []>} : vector<64x128xf32>, vector<128x128xf32>, vector<64x128xf32> -> vector<64x128xf32>
    %c0_3 = arith.constant 0 : index
    %c0_4 = arith.constant 0 : index
    %3 = vector.load %arg3[%c0_3, %c0_4] : memref<1x128xf32, #tpu.memory_space<vmem>>, vector<1x128xf32>
    %4 = vector.broadcast %3 : vector<1x128xf32> to vector<64x128xf32>
    %5 = arith.addf %2, %4 : vector<64x128xf32>
    %c0_5 = arith.constant 0 : index
    %c0_6 = arith.constant 0 : index
    %6 = vector.load %arg4[%c0_5, %c0_6] : memref<64x128xf32, #tpu.memory_space<vmem>>, vector<64x128xf32>
    tpu.vector_store %arg4[%c0_5, %c0_6], %5 {strides = array<i32>} : memref<64x128xf32, #tpu.memory_space<vmem>>, vector<64x128xf32>,
    return
  }
  func.func @transform_0(%arg0: i32) -> (i32, i32) {
    %c0_i32 = arith.constant 0 : i32
    %c0_i32_0 = arith.constant 0 : i32
    return %arg0, %c0_i32 : i32, i32
  }
  func.func @transform_1(%arg0: i32) -> (i32, i32) {
    %c0_i32 = arith.constant 0 : i32
    %c0_i32_0 = arith.constant 0 : i32
    %c0_i32_1 = arith.constant 0 : i32
    return %c0_i32, %c0_i32_0 : i32, i32
  }
  func.func @transform_2(%arg0: i32) -> (i32, i32) {
    %c0_i32 = arith.constant 0 : i32
    %c0_i32_0 = arith.constant 0 : i32
    %c0_i32_1 = arith.constant 0 : i32
    return %c0_i32, %c0_i32_0 : i32, i32
  }
  func.func @transform_3(%arg0: i32) -> (i32, i32) {
    %c0_i32 = arith.constant 0 : i32
    %c0_i32_0 = arith.constant 0 : i32
    return %arg0, %c0_i32 : i32, i32
  }
}

</mosaic_0001>

<bundles_post_ra>
// kernel: tpu_custom_call.1
= control target key start
LH: loop header
LB: loop body
LE: loop exit
PB: predicated region body
PF: predicated region fallthrough
CT: control target
= control target key end

     0   :  { %6 = vsyncpa [#allocation3], 0  ;;  %s124_s0 = inlined_call_operand.hbm [shape: f32[8,128], index: 0, kind: input, shape index: {}]   ;;  %s125_s1 = inlined_call_operand.hbm [shape: f32[8,128], index: 1, kind: output, shape index: {}]  }
   0x1   :  { %7 = vsyncpa [#allocation4], 0  ;;  %s88_s6 = smov [#allocation2]   ;;  %s40_s10 = scalar_lea.hbm %s124_s0, 128 }
   0x2   :  { %s14_s7 = sshll.u32 %s88_s6, 4  ;;  %p41_p0 = scmp.ne.s32.totalorder %s124_s0, %s40_s10  ;;  %s15_s7 = int_to_ptr.vmem [resolvable:$true] %s14_s7 }
   0x3   :  { %p44_p1 = scmp.lt.u32.totalorder %s40_s10, %s124_s0 }
   0x5   :  { %p46_p2 = pnand %p44_p1, %p41_p0 }
   0x7   :  { %49 = shalt.err (!%p46_p2)
}
   0x8   :  { %s50_s15 = scalar_lea.vmem %s15_s7, 128  ;;  %p55_p4 = scmp.lt.s32.totalorder %s15_s7, %s15_s7 }
   0x9   :  { %p51_p3 = scmp.ne.s32.totalorder %s15_s7, %s50_s15  ;;  %p56_p5 = scmp.lt.s32.totalorder %s50_s15, %s50_s15 }
   0xb   :  { %p57_p6 = por %p56_p5, %p55_p4 }
   0xd   :  { %p58_p7 = pnand %p57_p6, %p51_p3 }
   0xf   :  { %61 = shalt.err (!%p58_p7)
}
  0x10   :  { %17 = dma.hbm_to_vmem [thread:$0]  %s124_s0, 128, %s15_s7, [#allocation3]  }
  0x11   :  { %84 = dma.done.wait [#allocation3], 128  }
  0x12   :  { %85 = vsyncadd [#allocation3], 4294967168  ;;  %s89_s18 = smov [#allocation5]   ;;  %v21_v0 = vld [vmem:[#allocation2] sm:$0xff] }
  0x13   :  { %s29_s19 = sshll.u32 %s89_s18, 4  ;;  %22 = vst [vmem:[#allocation5] sm:$0xff] %v21_v0  ;;  %s30_s19 = int_to_ptr.vmem [resolvable:$true] %s29_s19 }
  0x14   :  { %s62_s20 = scalar_lea.vmem %s30_s19, 128  ;;  %p67_p9 = scmp.lt.s32.totalorder %s30_s19, %s30_s19 }
  0x15   :  { %p63_p8 = scmp.ne.s32.totalorder %s30_s19, %s62_s20  ;;  %p68_p10 = scmp.lt.s32.totalorder %s62_s20, %s62_s20 }
  0x17   :  { %p69_p11 = por %p68_p10, %p67_p9 }
  0x19   :  { %p70_p12 = pnand %p69_p11, %p63_p8 }
  0x1b   :  { %73 = shalt.err (!%p70_p12)
}
  0x1c   :  { %s74_s23 = scalar_lea.hbm %s125_s1, 128 }
  0x1d   :  { %p75_p13 = scmp.ne.s32.totalorder %s125_s1, %s74_s23  ;;  %p78_p0 = scmp.lt.u32.totalorder %s74_s23, %s125_s1 }
  0x1f   :  { %p80_p1 = pnand %p78_p0, %p75_p13 }
  0x21   :  { %83 = shalt.err (!%p80_p1)
}
  0x22   :  { %32 = dma.vmem_to_hbm [thread:$0]  %s30_s19, 128, %s125_s1, [#allocation4]  }
  0x23   :  { %86 = dma.done.wait [#allocation4], 128  }
  0x24   :  { %87 = vsyncadd [#allocation4], 4294967168 }
  0x25   :  { %36 = vsyncpa [#allocation3], 1 }
  0x26   :  { %37 = vsyncpa [#allocation4], 1 }

// kernel: tpu_custom_call.1
= control target key start
LH: loop header
LB: loop body
LE: loop exit
PB: predicated region body
PF: predicated region fallthrough
CT: control target
= control target key end

     0   :  { %8 = vsyncpa [#allocation3], 0  ;;  %s1024_s0 = inlined_call_operand.hbm [shape: f32[128,128], index: 0, kind: input, shape index: {}]   ;;  %s1025_s1 = inlined_call_operand.hbm [shape: f32[128,128], index: 1, kind: input, shape index: {}]   ;;  %s1026_s2 = inlined_call_operand.vmem [shape: f32[1,128], index: 2, kind: input, shape index: {}]   ;;  %s1027_s3 = inlined_call_operand.hbm [shape: f32[128,128], index: 3, kind: output, shape index: {}]  }
   0x1   :  { %10 = vsyncpa [#allocation3 + $0x1], 0 }
   0x2   :  { %11 = vsyncpa [#allocation6], 0 }
   0x3   :  { %12 = vsyncpa [#allocation4], 0 }
   0x4   :  { %14 = vsyncpa [#allocation4 + $0x1], 0  ;;  %s800_s12 = smov 0   ;;  %s802_s13 = smov 0  }
   0x5   :  { %s804_s14 = smov 0   ;;  %s806_s15 = smov 0  }
   0x6 LB: > { %s821_s16 = sadd.s32 4294967295, %s771_s15   ;;  %s447_s17 = sadd.s32 4294967294, %s771_s15   ;;  %s771_s15 = sphi %s806_s15, %s1047_s15   ;;  %s767_s14 = sphi %s804_s14, %s1046_s14   ;;  %s763_s13 = sphi %s802_s13, %s1045_s13   ;;  %s759_s12 = sphi %s800_s12, %s1044_s12  }
   0x7   : > { %p40_p0 = scmp.ne.s32.totalorder %s763_s13, %s759_s12  ;;  %p1028_p1 = scmp.eq.s32.totalorder %s821_s16, 0 }
   0x8   : > { %p112_p3 = scmp.eq.s32.totalorder %s447_s17, 1  ;;  %p448_p5 = scmp.ge.s32.totalorder %s771_s15, 1 }
   0x9   : > { %p830_p4 = por %p1028_p1, %p40_p0  ;;  %p119_p7 = scmp.lt.s32.totalorder %s771_s15, 3 }
   0xa   : > { %p835_p6 = por %p112_p3, %p40_p0  ;;  %s773_s21 = smov [#allocation5]  }
   0xb   : > { %s1031_s18 = scalar_select %p830_p4, 1, 0 }
   0xc   : > { %s1032_s19 = scalar_select %p835_p6, 1, 0 }
   0xd   : > { %p840_p8 = pnand %p448_p5, %p119_p7  ;;  %s131_s22 = sshll.u32 %s773_s21, 4  ;;  %s844_s22 = int_to_ptr.vmem [resolvable:$true] %s131_s22 }
   0xe   : > { %s856_s24 = sadd.s32 1, %s771_s15   ;;  %s27_s25 = sadd.s32 1, %s767_s14 }
   0xf   : > { %s1033_s20 = scalar_select %p840_p8, 1, 0 }
  0x10   : > { %p590_p9 = pneg %p840_p8  ;;  %s24_s26 = ssub.s32 %s771_s15, %s856_s24 }
  0x11   : > { %s643_s29 = scalar_lea.hbm %s1025_s1, 2048 }
  0x12   : > { %p851_p11 = pnand %p590_p9, %p1028_p1  ;;  %p644_p12 = scmp.ne.s32.totalorder %s1025_s1, %s643_s29 }
  0x13   : > { %p650_p5 = scmp.lt.u32.totalorder %s643_s29, %s1025_s1 }
  0x14   : > { %p645_p13 = pneg %p851_p11 }
  0x16   : > { %p646_p0 = pnand %p645_p13, %p644_p12 }
  0x18   : > { %p647_p3 = pneg %p646_p0 }
  0x1a   : > { %p652_p7 = pnand %p650_p5, %p647_p3 }
  0x1c   : > { %655 = shalt.err (!%p652_p7)
}
  0x1d   : > { %s656_s7 = scalar_lea.vmem %s844_s22, 2048  ;;  %p664_p2 = scmp.lt.s32.totalorder %s844_s22, %s844_s22 }
  0x1e   : > { %p657_p9 = scmp.ne.s32.totalorder %s844_s22, %s656_s7  ;;  %p665_p6 = scmp.lt.s32.totalorder %s656_s7, %s656_s7 }
  0x20   : > { %p659_p10 = pnand %p657_p9, %p645_p13  ;;  %p666_p4 = por %p665_p6, %p664_p2 }
  0x22   : > { %p660_p1 = pneg %p659_p10 }
  0x24   : > { %p667_p8 = pnand %p666_p4, %p660_p1 }
  0x26   : > { %670 = shalt.err (!%p667_p8)
}
  0x27   : > { %s774_s8 = smov 128   ;;  %s775_s9 = smov 8  }
  0x28   : > { %593 = dma.hbm_to_vmem [thread:$0]  (!%p851_p11), %s1025_s1, 2048, %s844_s22, [#allocation6], %s774_s8, %s774_s8, %s775_s9  }
  0x29   : > { %p25_p1 = scmp.eq.s32.totalorder %s24_s26, 0  ;;  %p34_p2 = scmp.ne.s32.totalorder %s767_s14, %s763_s13 }
  0x2a   : > { %p35_p4 = scmp.eq.s32.totalorder %s771_s15, 0  ;;  %p603_p6 = scmp.lt.s32.totalorder %s771_s15, 2 }
  0x2b   : > { %s890_s17 = scalar_select %p25_p1, %s767_s14, %s27_s25  }
  0x2c   : > { %p36_p8 = por %p35_p4, %p34_p2  ;;  %p1035_p10 = scmp.eq.s32.totalorder %s821_s16, 1 }
  0x2d   : > { %s148_s23 = sand.u32 1, %s767_s14   ;;  %s464_s27 = sshll.u32 %s771_s15, 10 }
  0x2e   : > { %p894_p12 = por %p1035_p10, %p34_p2  ;;  %s451_s28 = sshll.u32 %s148_s23, 6 }
  0x2f   : > { %s903_s4 = scalar_lea.hbm %s1024_s0, %s464_s27  ;;  %s152_s22 = scalar_lea.vmem [#allocation2], %s451_s28 }
  0x30   : > { %s159_s25 = sshll.u32 %s152_s22, 4  ;;  %p905_p11 = pnand %p603_p6, %p36_p8  ;;  %s909_s25 = int_to_ptr.vmem [resolvable:$true] %s159_s25 }
  0x31   : > { %s911_s5 = scalar_lea.sflag [#allocation3], %s148_s23  ;;  %s671_s6 = scalar_lea.hbm %s903_s4, 1024 }
  0x32   : > { %p672_p13 = scmp.ne.s32.totalorder %s903_s4, %s671_s6  ;;  %p673_p0 = pneg %p905_p11 }
  0x33   : > { %s676_s11 = scalar_lea.hbm %s1024_s0, 2048  ;;  %p677_p7 = scmp.lt.u32.totalorder %s903_s4, %s1024_s0 }
  0x34   : > { %p674_p3 = pnand %p673_p0, %p672_p13  ;;  %p678_p9 = scmp.lt.u32.totalorder %s676_s11, %s671_s6 }
  0x35   : > { %p680_p2 = scmp.lt.u32.totalorder %s671_s6, %s903_s4 }
  0x36   : > { %p675_p5 = pneg %p674_p3  ;;  %p679_p1 = por %p678_p9, %p677_p7 }
  0x38   : > { %p681_p4 = por %p680_p2, %p679_p1 }
  0x3a   : > { %p682_p6 = pnand %p681_p4, %p675_p5 }
  0x3c   : > { %685 = shalt.err (!%p682_p6)
}
  0x3d   : > { %s686_s23 = scalar_lea.vmem %s909_s25, 1024  ;;  %s776_s29 = smov [#allocation2]  }
  0x3e   : > { %p687_p8 = scmp.ne.s32.totalorder %s909_s25, %s686_s23  ;;  %s691_s30 = sshll.u32 %s776_s29, 4  ;;  %s692_s30 = int_to_ptr.vmem [resolvable:$false] %s691_s30 }
  0x3f   : > { %s693_s22 = scalar_lea.vmem %s692_s30, 2048  ;;  %p694_p3 = scmp.lt.s32.totalorder %s909_s25, %s692_s30 }
  0x40   : > { %p689_p10 = pnand %p687_p8, %p673_p0  ;;  %p695_p7 = scmp.lt.s32.totalorder %s693_s22, %s686_s23 }
  0x42   : > { %p690_p13 = pneg %p689_p10  ;;  %p696_p9 = por %p695_p7, %p694_p3 }
  0x44   : > { %p697_p1 = pnand %p696_p9, %p690_p13 }
  0x46   : > { %700 = shalt.err (!%p697_p1)
}
  0x47   : > { %597 = dma.hbm_to_vmem [thread:$0]  (!%p905_p11), %s903_s4, 1024, %s909_s25, %s911_s5, %s774_s8, %s774_s8, %s775_s9  }
  0x48   : > { %p1038_p0 = scmp.ne.s32.totalorder %s1033_s20, 0 }
  0x49   : > { %s945_s6 = sand.u32 (!%p1038_p0), 1, %s763_s13   ;;  %p1039_p5 = scmp.ne.s32.totalorder (!%p1038_p0), %s1031_s18, 0 }
  0x4a   : > { %171 = sbr.rel (%p1038_p0) target bundleno = 354 (0x162), region = 32  ;;  %s455_s7 = sshll.u32 (!%p1038_p0), %s945_s6, 6 }
  0x4b   : > { %s174_s10 = scalar_lea.sflag (!%p1038_p0), [#allocation3], %s945_s6  ;;  %s951_s26 = scalar_lea.vmem (!%p1038_p0), [#allocation2], %s455_s7 }
  0x51   : > { %746 = dma.done.wait (%p1039_p5), %s174_s10, 1024  }
  0x52   : > { %748 = vsyncadd (%p1039_p5), %s174_s10, 4294966272  ;;  %p1040_p11 = scmp.eq.s32.totalorder %s821_s16, 0 }
  0x54   : > { %750 = dma.done.wait (%p1040_p11), [#allocation6], 2048   ;;  %p1041_p2 = pmov %p1040_p11 }
  0x55   : > { %v214_v0 = vld [vmem:[#allocation5] sm:$0xff]  ;;  %v215_v1 = vld [vmem:[#allocation5 + $0x8] sm:$0xff]  ;;  %v216_v2 = vld [vmem:[#allocation5 + $0x10] sm:$0xff]  ;;  %s203_s8 = scalar_lea.vmem [#allocation7], %s455_s7  ;;  %s465_s4 = sshll.u32 %s821_s16, 10 }
  0x56   : > { %752 = vsyncadd (%p1041_p2), [#allocation6], 4294965248  ;;  %v534_v3 = vpack.c.bf16 %v215_v1, %v214_v0  ;;  %v217_v4 = vld [vmem:[#allocation5 + $0x18] sm:$0xff]  ;;  %v218_v6 = vld [vmem:[#allocation5 + $0x20] sm:$0xff]  ;;  %s364_s9 = sshll.u32 %s203_s8, 4  ;;  %s980_s16 = scalar_lea.hbm %s1027_s3, %s465_s4  ;;  %s975_s9 = int_to_ptr.vmem [resolvable:$true] %s364_s9 }
  0x57   : > { %v538_v5 = vpack.c.bf16 %v217_v4, %v216_v2  ;;  %v219_v7 = vld [vmem:[#allocation5 + $0x28] sm:$0xff]  ;;  %v206_v9 = vld [vmem:[%s951_s26] sm:$0xff]  ;;  %v220_v11 = vld [vmem:[#allocation5 + $0x30] sm:$0xff]  ;;  %s351_s11 = scalar_lea.sflag [#allocation4], %s945_s6  ;;  %s701_s27 = scalar_lea.vmem %s975_s9, 1024 }
  0x58   : > { %535 = vmatprep.subr.bf16.mxu0 %v534_v3  ;;  %566 = vmatprep.subr.bf16.mxu1 %v534_v3  ;;  %v542_v8 = vpack.c.bf16 %v219_v7, %v218_v6  ;;  %v210_v10 = vld [vmem:[%s951_s26 + $0x20] sm:$0xff]  ;;  %v221_v12 = vld [vmem:[#allocation5 + $0x38] sm:$0xff]  ;;  %v223_v15 = vld [vmem:[#allocation5 + $0x48] sm:$0xff]  ;;  %p702_p4 = scmp.ne.s32.totalorder %s975_s9, %s701_s27  ;;  %s777_s28 = smov [#allocation7]  }
  0x59   : > { %537 = vmatpush3.bf16.msra.mxu0 %v534_v3  ;;  %574 = vmatpush3.bf16.msra.mxu1 %v534_v3  ;;  %v546_v13 = vpack.c.bf16 %v221_v12, %v220_v11  ;;  %v222_v14 = vld [vmem:[#allocation5 + $0x40] sm:$0xff]  ;;  %v224_v17 = vld [vmem:[#allocation5 + $0x50] sm:$0xff]  ;;  %v225_v18 = vld [vmem:[#allocation5 + $0x58] sm:$0xff]  ;;  %s705_s23 = sshll.u32 %s777_s28, 4  ;;  %s706_s23 = int_to_ptr.vmem [resolvable:$false] %s705_s23 }
  0x5a   : > { %539 = vmatprep.subr.bf16.mxu0 %v538_v5  ;;  %567 = vmatprep.subr.bf16.mxu1 %v538_v5  ;;  %v550_v16 = vpack.c.bf16 %v223_v15, %v222_v14  ;;  %v554_v19 = vpack.c.bf16 %v225_v18, %v224_v17  ;;  %v226_v20 = vld [vmem:[#allocation5 + $0x60] sm:$0xff]  ;;  %v227_v21 = vld [vmem:[#allocation5 + $0x68] sm:$0xff]  ;;  %v228_v23 = vld [vmem:[#allocation5 + $0x70] sm:$0xff]  ;;  %p703_p6 = pnand %p702_p4, %p894_p12  ;;  %s707_s29 = scalar_lea.vmem %s706_s23, 2048 }
  0x5b   : > { %522 = vmatprep.mubr.f32.mxu0 %v206_v9  ;;  %528 = vmatprep.mubr.f32.mxu1 %v210_v10  ;;  %v558_v22 = vpack.c.bf16 %v227_v21, %v226_v20  ;;  %v229_v24 = vld [vmem:[#allocation5 + $0x78] sm:$0xff]  ;;  %v207_v26 = vld [vmem:[%s951_s26 + $0x8] sm:$0xff]  ;;  %v208_v28 = vld [vmem:[%s951_s26 + $0x10] sm:$0xff]  ;;  %p708_p10 = scmp.lt.s32.totalorder %s975_s9, %s706_s23  ;;  %p709_p13 = scmp.lt.s32.totalorder %s707_s29, %s701_s27 }
  0x5c   : > { %v562_v25 = vpack.c.bf16 %v229_v24, %v228_v23  ;;  %v211_v27 = vld [vmem:[%s951_s26 + $0x28] sm:$0xff]  ;;  %v212_v29 = vld [vmem:[%s951_s26 + $0x30] sm:$0xff]  ;;  %v209_v30 = vld [vmem:[%s951_s26 + $0x18] sm:$0xff]  ;;  %p704_p8 = pneg %p703_p6 }
  0x5d   : > { %541 = vmatpush3.bf16.msra.mxu0 %v538_v5  ;;  %575 = vmatpush3.bf16.msra.mxu1 %v538_v5  ;;  %v213_v31 = vld [vmem:[%s951_s26 + $0x38] sm:$0xff]  ;;  %v458_v32 = vld [vmem:[%s1026_s2] ss:$0 sm:$0xff]  ;;  %p710_p3 = por %p709_p13, %p708_p10 }
  0x5e   : > { %543 = vmatprep.subr.bf16.mxu0 %v542_v8  ;;  %568 = vmatprep.subr.bf16.mxu1 %v542_v8 }
  0x5f   : > { %p711_p7 = pnand %p710_p3, %p704_p8 }
  0x61   : > { %545 = vmatpush3.bf16.msra.mxu0 %v542_v8  ;;  %576 = vmatpush3.bf16.msra.mxu1 %v542_v8 }
  0x62   : > { %547 = vmatprep.subr.bf16.mxu0 %v546_v13  ;;  %569 = vmatprep.subr.bf16.mxu1 %v546_v13 }
  0x65   : > { %549 = vmatpush3.bf16.msra.mxu0 %v546_v13  ;;  %577 = vmatpush3.bf16.msra.mxu1 %v546_v13 }
  0x66   : > { %551 = vmatprep.subr.bf16.mxu0 %v550_v16  ;;  %570 = vmatprep.subr.bf16.mxu1 %v550_v16 }
  0x69   : > { %553 = vmatpush3.bf16.msra.mxu0 %v550_v16  ;;  %578 = vmatpush3.bf16.msra.mxu1 %v550_v16 }
  0x6a   : > { %555 = vmatprep.subr.bf16.mxu0 %v554_v19  ;;  %571 = vmatprep.subr.bf16.mxu1 %v554_v19 }
  0x6d   : > { %557 = vmatpush3.bf16.msra.mxu0 %v554_v19  ;;  %579 = vmatpush3.bf16.msra.mxu1 %v554_v19 }
  0x6e   : > { %559 = vmatprep.subr.bf16.mxu0 %v558_v22  ;;  %572 = vmatprep.subr.bf16.mxu1 %v558_v22 }
  0x71   : > { %561 = vmatpush3.bf16.msra.mxu0 %v558_v22  ;;  %580 = vmatpush3.bf16.msra.mxu1 %v558_v22 }
  0x72   : > { %563 = vmatprep.subr.bf16.mxu0 %v562_v25  ;;  %573 = vmatprep.subr.bf16.mxu1 %v562_v25 }
  0x75   : > { %565 = vmatpush3.bf16.msra.mxu0 %v562_v25  ;;  %581 = vmatpush3.bf16.msra.mxu1 %v562_v25 }
  0x78   : > { %523 = vmatmul.mubr.f32.vlgmr.msra.gmra.mrb[0].mxu0 %v207_v26  ;;  %529 = vmatmul.mubr.f32.vlgmr.msra.gmra.mrb[0].mxu1 %v211_v27 }
  0x79   : > { %525 = vmatprep.mubr.f32.mxu0 %v208_v28  ;;  %531 = vmatprep.mubr.f32.mxu1 %v212_v29 }
  0x7c   : > { %526 = vmatmul.mubr.f32.gmra.mrb[2].mxu0 %v209_v30  ;;  %532 = vmatmul.mubr.f32.gmra.mrb[2].mxu1 %v213_v31 }
 0x14b   : > { %v524_v33 = vpop.f32.mrb[0].mxu0  ;;  %v530_v34 = vpop.f32.mrb[0].mxu1 }
 0x14c   : > { %v309_v35 = vadd.f32 %v524_v33, %v458_v32  ;;  %v329_v36 = vadd.f32 %v530_v34, %v458_v32  ;;  %v303_v37 = vpop.f32.mrb[1].mxu0  ;;  %v323_v38 = vpop.f32.mrb[1].mxu1 }
 0x14d   : > { %v304_v39 = vadd.f32 %v458_v32, %v303_v37  ;;  %v324_v40 = vadd.f32 %v458_v32, %v323_v38 }
 0x14e   : > { %343 = vst [vmem:[%s203_s8 + $0x8] sm:$0xff] %v309_v35  ;;  %347 = vst [vmem:[%s203_s8 + $0x28] sm:$0xff] %v329_v36 }
 0x14f   : > { %342 = vst [vmem:[%s203_s8] sm:$0xff] %v304_v39  ;;  %346 = vst [vmem:[%s203_s8 + $0x20] sm:$0xff] %v324_v40  ;;  %v527_v41 = vpop.f32.mrb[2].mxu0  ;;  %v533_v42 = vpop.f32.mrb[2].mxu1 }
 0x150   : > { %v319_v43 = vadd.f32 %v527_v41, %v458_v32  ;;  %v339_v44 = vadd.f32 %v533_v42, %v458_v32  ;;  %v313_v45 = vpop.f32.mrb[3].mxu0  ;;  %v333_v46 = vpop.f32.mrb[3].mxu1 }
 0x151   : > { %v314_v47 = vadd.f32 %v458_v32, %v313_v45  ;;  %v334_v48 = vadd.f32 %v458_v32, %v333_v46 }
 0x152   : > { %345 = vst [vmem:[%s203_s8 + $0x18] sm:$0xff] %v319_v43  ;;  %349 = vst [vmem:[%s203_s8 + $0x38] sm:$0xff] %v339_v44 }
 0x153   : > { %344 = vst [vmem:[%s203_s8 + $0x10] sm:$0xff] %v314_v47  ;;  %348 = vst [vmem:[%s203_s8 + $0x30] sm:$0xff] %v334_v48 }
 0x154   : > { %714 = shalt.err (!%p711_p7)
}
 0x155   : > { %s715_s30 = scalar_lea.hbm %s980_s16, 1024  ;;  %s719_s10 = scalar_lea.hbm %s1027_s3, 2048 }
 0x156   : > { %p716_p9 = scmp.ne.s32.totalorder %s980_s16, %s715_s30  ;;  %p720_p5 = scmp.lt.u32.totalorder %s980_s16, %s1027_s3 }
 0x157   : > { %p721_p11 = scmp.lt.u32.totalorder %s719_s10, %s715_s30  ;;  %p723_p4 = scmp.lt.u32.totalorder %s715_s30, %s980_s16 }
 0x158   : > { %p717_p1 = pnand %p716_p9, %p894_p12 }
 0x159   : > { %p722_p2 = por %p721_p11, %p720_p5 }
 0x15a   : > { %p718_p0 = pneg %p717_p1 }
 0x15b   : > { %p724_p6 = por %p723_p4, %p722_p2 }
 0x15d   : > { %p725_p8 = pnand %p724_p6, %p718_p0 }
 0x15f   : > { %728 = shalt.err (!%p725_p8)
}
 0x160   : > { %s778_s20 = smov 128   ;;  %s779_s8 = smov 8  }
 0x161   : > { %588 = dma.vmem_to_hbm [thread:$0]  (%p894_p12), %s975_s9, 1024, %s980_s16, %s351_s11, %s778_s20, %s778_s20, %s779_s8  }
 0x162 PF: > { %s379_s4 = sand.u32 1, %s759_s12   ;;  %p1042_p10 = scmp.ne.s32.totalorder %s1032_s19, 0 }
 0x163   : > { %p1043_p13 = scmp.ge.s32.totalorder %s771_s15, 2  ;;  %s380_s25 = scalar_lea.sflag [#allocation4], %s379_s4 }
 0x165   : > { %p599_p3 = pnand %p1043_p13, %p1042_p10 }
 0x167   : > { %754 = dma.done.wait (!%p599_p3), %s380_s25, 1024  }
 0x168   : > { %756 = vsyncadd (!%p599_p3), %s380_s25, 4294966272  ;;  %p17_p7 = scmp.ge.s32.totalorder %s856_s24, 4   ;;  %s1044_s12 = smov %s763_s13 }
 0x169   : > { %s1045_s13 = smov %s767_s14  ;;  %s1046_s14 = smov %s890_s17 }
 0x16a   : > { %s1047_s15 = smov %s856_s24  ;;  %19 = sbr.rel (!%p17_p7) target bundleno = 6 (0x6), region = 81 }
 0x171   :  { %385 = vsyncpa [#allocation3], 1 }
 0x172   :  { %387 = vsyncpa [#allocation3 + $0x1], 1 }
 0x173   :  { %388 = vsyncpa [#allocation6], 1 }
 0x174   :  { %389 = vsyncpa [#allocation4], 1 }
 0x175   :  { %391 = vsyncpa [#allocation4 + $0x1], 1 }

</bundles_post_ra>
